<compile_context>
chip_gen: v6e
topology: v6e:2x2x1
jax: 0.10.0
libtpu: 0.0.40
codegen_flags: <defaults>
</compile_context>

<pallas_src>
import math

import jax
import jax.numpy as jnp
from jax.experimental import pallas as pl
from jax.experimental.pallas import tpu as pltpu


TARGET_TILE_BYTES = 4 << 20          # ~4 MiB per buffer
VMEM_LIMIT_BYTES = 32 * 1024 * 1024  # safe on v5e / v6e / v7x


def _broadcast_add_kernel(x_ref, b_ref, o_ref):
    # x_ref: (tile_r, tile_c); b_ref: (1, tile_c) -> sublane broadcast add.
    o_ref[...] = x_ref[...] + b_ref[...]


def _pick_tiles(rows, cols, itemsize, target_tile_bytes=TARGET_TILE_BYTES):
    """Choose (tile_r, tile_c) with ~target_tile_bytes per buffer.

    x + out are each double-buffered, so the VMEM footprint is about
    4 * target (+ the tiny bias block), well under VMEM_LIMIT_BYTES.
    """
    sub = 8 * max(1, 4 // itemsize)        # sublane packing: 8 f32, 16 bf16, 32 int8
    row_bytes = cols * itemsize
    total_bytes = rows * row_bytes

    if total_bytes <= target_tile_bytes:
        return rows, cols                  # single full-extent block

    if sub * row_bytes > target_tile_bytes and cols > 128:
        # Very wide rows: tile the lane axis too (multiple of 128) so even the
        # minimum row slab stays inside the VMEM budget (v7x: 64 MiB physical).
        tile_c = max(128, (target_tile_bytes // (sub * itemsize)) // 128 * 128)
        return min(sub, rows), min(tile_c, cols)

    # Row tiling only; prefer an even number of steps so v7x's two
    # TensorCores each stream half of the data.
    steps = max(2, pl.cdiv(total_bytes, target_tile_bytes))
    steps += steps % 2
    tile_r = pl.cdiv(rows, steps)
    tile_r = pl.cdiv(tile_r, sub) * sub    # dtype-aware sublane alignment
    while tile_r > sub and tile_r * row_bytes > target_tile_bytes:
        tile_r -= sub                      # keep each buffer within budget
    return min(tile_r, rows), cols


def _row_bias_add(x2d, bias_row, target_tile_bytes=TARGET_TILE_BYTES):
    """x2d: (R, L); bias_row: (1, L), same dtype. Returns x2d + bias_row."""
    rows, cols = x2d.shape
    tile_r, tile_c = _pick_tiles(rows, cols, x2d.dtype.itemsize, target_tile_bytes)
    grid = (pl.cdiv(rows, tile_r), pl.cdiv(cols, tile_c))
    nbytes = x2d.size * x2d.dtype.itemsize

    return pl.pallas_call(
        _broadcast_add_kernel,
        out_shape=jax.ShapeDtypeStruct((rows, cols), x2d.dtype),
        grid=grid,
        in_specs=[
            pl.BlockSpec((tile_r, tile_c), lambda i, j: (i, j)),
            pl.BlockSpec((1, tile_c), lambda i, j: (0, j)),
        ],
        out_specs=pl.BlockSpec((tile_r, tile_c), lambda i, j: (i, j)),
        compiler_params=pltpu.CompilerParams(
            dimension_semantics=("parallel", "parallel"),
            vmem_limit_bytes=VMEM_LIMIT_BYTES,
        ),
        cost_estimate=pl.CostEstimate(
            flops=x2d.size, transcendentals=0, bytes_accessed=2 * nbytes),
    )(x2d, bias_row)


def _lane_dense_bias_add(x2d, bias_row):
    """Add a broadcast bias row, repacking for lane-dense (128-wide) stores."""
    rows, cols = x2d.shape
    k = 1
    if cols % 128 != 0:
        k = 128 // math.gcd(cols, 128)     # fold factor making lanes = k*cols
    if k <= 1 or rows < k:
        return _row_bias_add(x2d, bias_row)

    main_rows = (rows // k) * k
    folded = x2d[:main_rows].reshape(main_rows // k, k * cols)
    folded_bias = jnp.tile(bias_row, (1, k))
    out_main = _row_bias_add(folded, folded_bias).reshape(main_rows, cols)
    if main_rows == rows:
        return out_main

    # Remainder (< k rows): tiny masked-store tail; >99% of traffic stays on
    # the lane-dense fast path above.
    out_tail = _row_bias_add(x2d[main_rows:], bias_row)
    return jnp.concatenate([out_main, out_tail], axis=0)


def add_bias(x, bias):
    """bias has shape (C, 1), mirroring nn.Parameter(bias.unsqueeze(1))."""
    C = bias.shape[0]
    # TODO(synk): bias is cast to x.dtype before the add; PyTorch type
    # promotion (e.g. f32 bias + bf16 x -> f32) is not reproduced for
    # mixed-dtype inputs.  Identical for the usual same-dtype case.
    bias_vec = bias.reshape(C).astype(x.dtype)

    if x.ndim == 2:
        assert x.shape[1] == C, "channel mismatch"
        return _lane_dense_bias_add(x, bias_vec.reshape(1, C))
    elif x.ndim == 4:
        assert x.shape[1] == C, "channel mismatch (layout: NCHW)"
        N, _, H, W = x.shape
        HW = H * W
        xf = x.reshape(N, C * HW)                       # free view of contiguous NCHW
        brow = jnp.repeat(bias_vec, HW).reshape(1, C * HW)
        return _lane_dense_bias_add(xf, brow).reshape(N, C, H, W)
    else:
        raise ValueError("AddBias kernel supports 2D (N,C) or 4D NCHW inputs")


if __name__ == "__main__":
    key = jax.random.PRNGKey(0)
    k_bias, k_x4, k_x2, k_x2b, k_x2c, k_x4b = jax.random.split(key, 6)

    C = 4
    # Deterministic parameter init: the module stores bias.unsqueeze(1) -> (C, 1).
    bias_param = 0.1 * jax.random.normal(k_bias, (C, 1), dtype=jnp.float32)

    # 4D NCHW case, C*H*W already a multiple of 128 -> direct lane-dense path.
    x4 = jax.random.normal(k_x4, (2, C, 16, 16), dtype=jnp.float32)
    y4 = add_bias(x4, bias_param)
    jax.block_until_ready(y4)
    ref4 = x4 + bias_param.reshape(1, C, 1, 1)
    assert jnp.allclose(y4, ref4, atol=1e-6), "4D AddBias mismatch"

    # 2D (N, C), N smaller than the fold factor -> tiny narrow-lane path.
    x2 = jax.random.normal(k_x2, (8, C), dtype=jnp.float32)
    y2 = add_bias(x2, bias_param)
    jax.block_until_ready(y2)
    ref2 = x2 + bias_param.reshape(1, C)
    assert jnp.allclose(y2, ref2, atol=1e-6), "2D AddBias mismatch"

    # 2D case exercising the lane-dense fold with no remainder.
    x2b = jax.random.normal(k_x2b, (64, C), dtype=jnp.float32)
    y2b = add_bias(x2b, bias_param)
    jax.block_until_ready(y2b)
    ref2b = x2b + bias_param.reshape(1, C)
    assert jnp.allclose(y2b, ref2b, atol=1e-6), "2D lane-dense AddBias mismatch"

    # 2D case exercising the fold + remainder-tail split (70 = 2*32 + 6).
    x2c = jax.random.normal(k_x2c, (70, C), dtype=jnp.float32)
    y2c = add_bias(x2c, bias_param)
    jax.block_until_ready(y2c)
    ref2c = x2c + bias_param.reshape(1, C)
    assert jnp.allclose(y2c, ref2c, atol=1e-6), "2D fold+tail AddBias mismatch"

    # 4D case with H*W=49 (not a multiple of 128) exercising fold + tail.
    x4b = jax.random.normal(k_x4b, (33, C, 7, 7), dtype=jnp.float32)
    y4b = add_bias(x4b, bias_param)
    jax.block_until_ready(y4b)
    ref4b = x4b + bias_param.reshape(1, C, 1, 1)
    assert jnp.allclose(y4b, ref4b, atol=1e-6), "4D fold+tail AddBias mismatch"

    # bf16 input (dtype-aware tiling path; bias cast to bf16, matching ref).
    x2d_bf16 = jax.random.normal(k_x2b, (64, C), dtype=jnp.bfloat16)
    y2d_bf16 = add_bias(x2d_bf16, bias_param)
    jax.block_until_ready(y2d_bf16)
    ref_bf16 = x2d_bf16 + bias_param.reshape(1, C).astype(jnp.bfloat16)
    assert jnp.allclose(y2d_bf16.astype(jnp.float32),
                        ref_bf16.astype(jnp.float32), atol=1e-2), "bf16 AddBias mismatch"

    print("KERNEL_OK")
</pallas_src>

<mosaic_0001>
module attributes {stable_mosaic.version = 11 : i64} {
  func.func @_broadcast_add_kernel(%arg0: i32, %arg1: i32, %arg2: memref<2x1024xf32, #tpu.memory_space<vmem>>, %arg3: memref<1x1024xf32, #tpu.memory_space<vmem>>, %arg4: memref<2x1024xf32, #tpu.memory_space<vmem>>) attributes {dimension_semantics = [#tpu.dimension_semantics<parallel>, #tpu.dimension_semantics<parallel>], iteration_bounds = array<i64: 1, 1>, scalar_prefetch = 0 : i64, scratch_operands = 0 : i64, tpu.core_type = #tpu.core_type<tc>, window_params = [{transform_indices = @transform_0, window_bounds = array<i64: 2, 1024>}, {transform_indices = @transform_1, window_bounds = array<i64: 1, 1024>}, {transform_indices = @transform_2, window_bounds = array<i64: 2, 1024>}]} {
    %c0 = arith.constant 0 : index
    %c0_0 = arith.constant 0 : index
    %0 = vector.load %arg2[%c0, %c0_0] : memref<2x1024xf32, #tpu.memory_space<vmem>>, vector<2x1024xf32>
    %c0_1 = arith.constant 0 : index
    %c0_2 = arith.constant 0 : index
    %1 = vector.load %arg3[%c0_1, %c0_2] : memref<1x1024xf32, #tpu.memory_space<vmem>>, vector<1x1024xf32>
    %2 = vector.broadcast %1 : vector<1x1024xf32> to vector<2x1024xf32>
    %3 = arith.addf %0, %2 : vector<2x1024xf32>
    %c0_3 = arith.constant 0 : index
    %c0_4 = arith.constant 0 : index
    %4 = vector.load %arg4[%c0_3, %c0_4] : memref<2x1024xf32, #tpu.memory_space<vmem>>, vector<2x1024xf32>
    tpu.vector_store %arg4[%c0_3, %c0_4], %3 {strides = array<i32>} : memref<2x1024xf32, #tpu.memory_space<vmem>>, vector<2x1024xf32>,
    return
  }
  func.func @transform_0(%arg0: i32, %arg1: i32) -> (i32, i32) {
    %c0_i32 = arith.constant 0 : i32
    return %arg0, %arg1 : i32, i32
  }
  func.func @transform_1(%arg0: i32, %arg1: i32) -> (i32, i32) {
    %c0_i32 = arith.constant 0 : i32
    %c0_i32_0 = arith.constant 0 : i32
    return %c0_i32, %arg1 : i32, i32
  }
  func.func @transform_2(%arg0: i32, %arg1: i32) -> (i32, i32) {
    %c0_i32 = arith.constant 0 : i32
    return %arg0, %arg1 : i32, i32
  }
}

</mosaic_0001>

<bundles_post_ra>
// kernel: tpu_custom_call.1
= control target key start
LH: loop header
LB: loop body
LE: loop exit
PB: predicated region body
PF: predicated region fallthrough
CT: control target
= control target key end

     0   :  { %7 = vsyncpa [#allocation3], 0  ;;  %s226_s0 = inlined_call_operand.hbm [shape: f32[2,1024], index: 0, kind: input, shape index: {}]   ;;  %s227_s1 = inlined_call_operand.hbm [shape: f32[1,1024], index: 1, kind: input, shape index: {}]   ;;  %s228_s2 = inlined_call_operand.hbm [shape: f32[2,1024], index: 2, kind: output, shape index: {}]  }
   0x1   :  { %8 = vsyncpa [#allocation6], 0 }
   0x2   :  { %9 = vsyncpa [#allocation4], 0  ;;  %s198_s9 = smov [#allocation2]   ;;  %s199_s11 = smov [#allocation5]  }
   0x3   :  { %s16_s10 = sshll.u32 %s198_s9, 4  ;;  %s26_s12 = sshll.u32 %s199_s11, 4  ;;  %s17_s10 = int_to_ptr.vmem [resolvable:$true] %s16_s10  ;;  %s27_s12 = int_to_ptr.vmem [resolvable:$true] %s26_s12 }
   0x4   :  { %s140_s13 = scalar_lea.vmem %s17_s10, 256  ;;  %p145_p1 = scmp.lt.s32.totalorder %s17_s10, %s17_s10 }
   0x5   :  { %p141_p0 = scmp.ne.s32.totalorder %s17_s10, %s140_s13  ;;  %p146_p2 = scmp.lt.s32.totalorder %s140_s13, %s140_s13 }
   0x7   :  { %p147_p3 = por %p146_p2, %p145_p1 }
   0x9   :  { %p148_p4 = pnand %p147_p3, %p141_p0 }
   0xb   :  { %151 = shalt.err (!%p148_p4)
}
   0xc   :  { %19 = dma.hbm_to_vmem [thread:$0]  %s226_s0, 256, %s17_s10, [#allocation3]  }
   0xd   :  { %s160_s16 = scalar_lea.vmem %s27_s12, 128  ;;  %p165_p6 = scmp.lt.s32.totalorder %s27_s12, %s27_s12 }
   0xe   :  { %p161_p5 = scmp.ne.s32.totalorder %s27_s12, %s160_s16  ;;  %p166_p7 = scmp.lt.s32.totalorder %s160_s16, %s160_s16 }
  0x10   :  { %p167_p8 = por %p166_p7, %p165_p6 }
  0x12   :  { %p168_p9 = pnand %p167_p8, %p161_p5 }
  0x14   :  { %171 = shalt.err (!%p168_p9)
}
  0x15   :  { %29 = dma.hbm_to_vmem [thread:$0]  %s227_s1, 128, %s27_s12, [#allocation6]  }
  0x16   :  { %192 = dma.done.wait [#allocation3], 256  }
  0x17   :  { %193 = vsyncadd [#allocation3], 4294967040 }
  0x18   :  { %194 = dma.done.wait [#allocation6], 128  }
  0x19   :  { %195 = vsyncadd [#allocation6], 4294967168  ;;  %v40_v0 = vlaneseq  ;;  %v200_v1 = vmov 1983009808   ;;  %v38_v13 = vld [vmem:[#allocation5] sm:$0xff]  ;;  %v36_v29 = vld [vmem:[#allocation2] sm:$0xff] }
  0x1a   :  { %v75_v2 = vunpack.c.l.s4 %v200_v1  ;;  %v37_v33 = vld [vmem:[#allocation2 + $0x8] sm:$0xff]  ;;  %s201_s0 = smov [#allocation7]  }
  0x1b   :  { %v41_v3 = vshrl.u32 %v40_v0, 7  ;;  %s118_s1 = sshll.u32 %s201_s0, 4  ;;  %s119_s1 = int_to_ptr.vmem [resolvable:$true] %s118_s1 }
  0x1c   :  { %v76_v4 = vunpack.c.0.s8 %v75_v2  ;;  %s172_s19 = scalar_lea.vmem %s119_s1, 256  ;;  %p177_p11 = scmp.lt.s32.totalorder %s119_s1, %s119_s1 }
  0x1d   :  { %v42_v5 = vsub.s32 0, %v41_v3  ;;  %v46_v6 = vsub.s32 1, %v41_v3  ;;  %v50_v7 = vsub.s32 2, %v41_v3  ;;  %v54_v8 = vsub.s32 3, %v41_v3  ;;  %p173_p10 = scmp.ne.s32.totalorder %s119_s1, %s172_s19  ;;  %p178_p12 = scmp.lt.s32.totalorder %s172_s19, %s172_s19 }
  0x1e   :  { %v58_v9 = vsub.s32 4, %v41_v3  ;;  %v62_v10 = vsub.s32 5, %v41_v3  ;;  %v66_v11 = vsub.s32 6, %v41_v3  ;;  %v70_v12 = vsub.s32 7, %v41_v3 }
  0x1f   :  { %v79_v14 = vsub.s32 %v76_v4, %v41_v3  ;;  %v43_v15 = vrot.slane %v38_v13, %v42_v5  ;;  %v47_v16 = vrot.slane %v38_v13, %v46_v6  ;;  %v51_v17 = vrot.slane %v38_v13, %v50_v7  ;;  %p179_p13 = por %p178_p12, %p177_p11 }
  0x20   :  { %v55_v18 = vrot.slane %v38_v13, %v54_v8  ;;  %v59_v19 = vrot.slane %v38_v13, %v58_v9  ;;  %v63_v20 = vrot.slane %v38_v13, %v62_v10  ;;  %v67_v21 = vrot.slane %v38_v13, %v66_v11 }
  0x21   :  { %v71_v22 = vrot.slane %v38_v13, %v70_v12  ;;  %v72_v23 = vcombine.low %v43_v15, %v47_v16  ;;  %p180_p0 = pnand %p179_p13, %p173_p10 }
  0x22   :  { %v73_v24 = vcombine.low %v51_v17, %v55_v18  ;;  %v89_v25 = vcombine.low %v59_v19, %v63_v20 }
  0x23   :  { %v90_v26 = vcombine.low %v67_v21, %v71_v22  ;;  %v80_v27 = vrot.slane %v72_v23, %v79_v14 }
  0x24   :  { %v87_v28 = vrot.slane %v73_v24, %v79_v14  ;;  %v97_v30 = vrot.slane %v89_v25, %v79_v14 }
  0x25   :  { %v104_v31 = vrot.slane %v90_v26, %v79_v14 }
  0x26   :  { %v88_v32 = vcombine.low %v80_v27, %v87_v28 }
  0x27   :  { %v105_v34 = vcombine.low %v97_v30, %v104_v31 }
  0x28   :  { %v108_v35 = vadd.f32 %v88_v32, %v36_v29 }
  0x29   :  { %v109_v36 = vadd.f32 %v105_v34, %v37_v33 }
  0x2a   :  { %110 = vst [vmem:[#allocation7] sm:$0xff] %v108_v35 }
  0x2b   :  { %111 = vst [vmem:[#allocation7 + $0x8] sm:$0xff] %v109_v36 }
  0x2c   :  { %183 = shalt.err (!%p180_p0)
}
  0x2d   :  { %121 = dma.vmem_to_hbm [thread:$0]  %s119_s1, 256, %s228_s2, [#allocation4]  }
  0x2e   :  { %196 = dma.done.wait [#allocation4], 256  }
  0x2f   :  { %197 = vsyncadd [#allocation4], 4294967040 }
  0x30   :  { %125 = vsyncpa [#allocation3], 1 }
  0x31   :  { %126 = vsyncpa [#allocation6], 1 }
  0x32   :  { %127 = vsyncpa [#allocation4], 1 }

</bundles_post_ra>
